<compile_context>
chip_gen: v7x
topology: tpu7x:2x2x1
jax: 0.10.0
libtpu: 0.0.40
codegen_flags: <defaults>
</compile_context>

<pallas_src>
import jax
import jax.numpy as jnp
from jax.experimental import pallas as pl
from jax.experimental.pallas import tpu as pltpu


# ---------------------------------------------------------------------------
# Kernels
# ---------------------------------------------------------------------------
def _normalize_row_params_kernel(x_ref, p_ref, o_ref):
    # x_ref: (TR, TL) tile; p_ref: (TR, 2) f32 with [:,0]=mean, [:,1]=std.
    # mean/std broadcast across the lane axis.
    x = x_ref[...].astype(jnp.float32)
    p = p_ref[...]
    mean = p[:, 0:1]
    std = p[:, 1:2]
    o_ref[...] = ((x - mean) / std).astype(o_ref.dtype)


def _normalize_lane_params_kernel(x_ref, p_ref, o_ref):
    # x_ref: (TR, TL) tile; p_ref: (2, TL) f32 with [0]=mean, [1]=std.
    # mean/std broadcast across the sublane axis.
    x = x_ref[...].astype(jnp.float32)
    p = p_ref[...]
    mean = p[0:1, :]
    std = p[1:2, :]
    o_ref[...] = ((x - mean) / std).astype(o_ref.dtype)


# ---------------------------------------------------------------------------
# Tiling / VMEM helpers
# ---------------------------------------------------------------------------
def _vmem_capacity_bytes():
    try:
        info = pltpu.get_tpu_info()
        cap = getattr(info, "vmem_capacity_bytes", None)
        if cap:
            return int(cap)
    except Exception:
        pass
    return 64 << 20  # conservative default: v7x per-TensorCore VMEM


def _largest_aligned_divisor(total, align, cap):
    """Largest t with t % align == 0, total % t == 0 and t <= max(cap, align).

    Assumes total % align == 0 and total >= align.
    """
    m = total // align
    cap_m = max(1, cap // align)
    best = 1
    d = 1
    while d * d <= m:
        if m % d == 0:
            if d <= cap_m and d > best:
                best = d
            q = m // d
            if q <= cap_m and q > best:
                best = q
        d += 1
    return best * align


def _choose_tiles(R, L, in_itemsize, out_itemsize, sub, vmem_cap):
    """Pick (row_tile, lane_tile) for streaming a (R, L) array."""
    per_elem = in_itemsize + out_itemsize          # bytes moved per element
    max_itemsize = max(in_itemsize, out_itemsize)

    # Block budget: ~1-4 MiB blocks are the HBM-streaming sweet spot; the
    # total pipelined footprint (2 in bufs + 2 out bufs) must stay well under
    # the per-core VMEM (64 MiB on v7x, 128 MiB on v5e/v6e).
    footprint_cap = min(32 << 20, (vmem_cap * 2) // 5)
    max_block_elems = max(sub * 128,
                          min((4 << 20) // max_itemsize,
                              footprint_cap // (2 * per_elem)))

    # On large inputs keep >= 4 grid steps so both TensorCores of a dual-core
    # chip (v7x) get work under "parallel" dimension semantics.
    big = R * L * max_itemsize >= (8 << 20)
    min_steps = 4 if big else 1

    if R % sub == 0:
        cap_rows = max_block_elems // max(L, 1)
        if min_steps > 1:
            cap_rows = min(cap_rows, R // min_steps)
        tr = _largest_aligned_divisor(R, sub, max(cap_rows, sub))
        if tr * L > max_block_elems and L % 128 == 0:
            # Even the minimal row tile is too big -> also tile the lane axis.
            cap_lanes = max(128, max_block_elems // tr)
            tl = _largest_aligned_divisor(L, 128, cap_lanes)
        else:
            tl = L
        return tr, tl

    # Rows not a multiple of the sublane packing: keep the full row extent
    # (block dim == array dim is always legal) and pipeline along the lanes.
    if L % 128 == 0:
        cap_lanes = max_block_elems // max(R, 1)
        if min_steps > 1:
            cap_lanes = min(cap_lanes, L // min_steps)
        tl = _largest_aligned_divisor(L, 128, max(cap_lanes, 128))
        return R, tl

    # Last resort: a single whole-array block (only tiny/awkward shapes).
    # TODO(synk): pad rows up to the sublane multiple to restore pipelining for
    # large arrays whose trailing dims are not (8,128)-friendly.
    return R, L


def _vmem_limit_bytes(tr, tl, in_itemsize, out_itemsize, params_block_bytes,
                      vmem_cap):
    block = tr * tl
    # 2x double-buffered input + output blocks + padded params blocks, with
    # generous slack for compiler scratch; never more than 3/4 of the chip's
    # per-core VMEM.
    footprint = 2 * block * (in_itemsize + out_itemsize) + 2 * params_block_bytes
    limit = max(16 << 20, 2 * footprint + (4 << 20))
    return int(min(limit, (vmem_cap * 3) // 4))


# ---------------------------------------------------------------------------
# Wrapper
# ---------------------------------------------------------------------------
def normalize(x, mean, std, *, donate_input=False):
    """Pallas equivalent of Normalize.forward: (x - mean[c]) / std[c].

    x:    (N, C, H, W) array
    mean: (C,) array-like
    std:  (C,) array-like
    """
    N, C, H, W = x.shape
    hw = H * W

    x_dtype = x.dtype
    # Force a floating output dtype: integer inputs must not be truncated.
    out_dtype = x_dtype if jnp.issubdtype(x_dtype, jnp.floating) else jnp.float32

    mean_f32 = jnp.asarray(mean, jnp.float32).reshape(C)
    std_f32 = jnp.asarray(std, jnp.float32).reshape(C)

    in_itemsize = jnp.dtype(x_dtype).itemsize
    out_itemsize = jnp.dtype(out_dtype).itemsize
    # Sublane packing of the narrowest dtype touching VMEM: 8 rows for 32-bit,
    # 16 for bf16/f16, 32 for (u)int8 / fp8.
    sub = max(8, 32 // min(in_itemsize, out_itemsize))

    use_row_params = (hw % 128 == 0)

    if use_row_params:
        # Lane axis = H*W (already a multiple of 128 -> lane-dense stores).
        R, L = N * C, hw
        x2d = x.reshape(R, L)
        params = jnp.stack(
            [jnp.tile(mean_f32, N), jnp.tile(std_f32, N)], axis=1)   # (R, 2)
        kernel = _normalize_row_params_kernel
    else:
        # Widest possible lane axis for non-128-multiple spatial maps.
        R, L = N, C * hw
        x2d = x.reshape(R, L)
        params = jnp.stack(
            [jnp.repeat(mean_f32, hw), jnp.repeat(std_f32, hw)], axis=0)  # (2, L)
        kernel = _normalize_lane_params_kernel

    vmem_cap = _vmem_capacity_bytes()
    tr, tl = _choose_tiles(R, L, in_itemsize, out_itemsize, sub, vmem_cap)
    grid = (R // tr, L // tl)

    if use_row_params:
        params_spec = pl.BlockSpec((tr, 2), lambda i, j: (i, 0))
        params_block_bytes = tr * 128 * 4          # lane-padded to 128
    else:
        params_spec = pl.BlockSpec((2, tl), lambda i, j: (0, j))
        params_block_bytes = 8 * tl * 4            # sublane-padded to 8

    vmem_limit = _vmem_limit_bytes(tr, tl, in_itemsize, out_itemsize,
                                   params_block_bytes, vmem_cap)

    aliases = {}
    if donate_input and out_dtype == x_dtype:
        aliases = {0: 0}

    out2d = pl.pallas_call(
        kernel,
        out_shape=jax.ShapeDtypeStruct((R, L), out_dtype),
        grid_spec=pltpu.PrefetchScalarGridSpec(
            num_scalar_prefetch=0,
            grid=grid,
            in_specs=[
                pl.BlockSpec((tr, tl), lambda i, j: (i, j)),
                params_spec,
            ],
            out_specs=pl.BlockSpec((tr, tl), lambda i, j: (i, j)),
        ),
        compiler_params=pltpu.CompilerParams(
            dimension_semantics=("parallel", "parallel"),
            vmem_limit_bytes=vmem_limit,
        ),
        input_output_aliases=aliases,
    )(x2d, params)

    return out2d.reshape(N, C, H, W)


# ---------------------------------------------------------------------------
# Self-test
# ---------------------------------------------------------------------------
if __name__ == "__main__":
    key = jax.random.PRNGKey(0)
    N, C, H, W = 2, 4, 16, 16

    x = jax.random.normal(key, (N, C, H, W), dtype=jnp.float32)
    # Deterministic synthetic per-channel statistics.
    mean = jnp.array([0.1307, 0.25, -0.1, 0.05], dtype=jnp.float32)
    std = jnp.array([0.3081, 0.5, 1.25, 0.75], dtype=jnp.float32)

    out = jax.block_until_ready(normalize(x, mean, std))
    ref = (x - mean[None, :, None, None]) / std[None, :, None, None]
    assert out.shape == (N, C, H, W)
    assert out.dtype == x.dtype
    assert jnp.allclose(out, ref, atol=1e-5, rtol=1e-5)

    # Also exercise the lane-params fallback layout (spatial extent not a
    # multiple of 128, MNIST-style 14x14 feature maps).
    H2 = W2 = 14
    x2 = jax.random.normal(jax.random.PRNGKey(1), (N, C, H2, W2),
                           dtype=jnp.float32)
    out2 = jax.block_until_ready(normalize(x2, mean, std))
    ref2 = (x2 - mean[None, :, None, None]) / std[None, :, None, None]
    assert jnp.allclose(out2, ref2, atol=1e-5, rtol=1e-5)

    print("KERNEL_OK")
</pallas_src>

<mosaic_0001>
module attributes {stable_mosaic.version = 11 : i64} {
  func.func @_normalize_row_params_kernel(%arg0: i32, %arg1: i32, %arg2: memref<8x256xf32, #tpu.memory_space<vmem>>, %arg3: memref<8x2xf32, #tpu.memory_space<vmem>>, %arg4: memref<8x256xf32, #tpu.memory_space<vmem>>) attributes {dimension_semantics = [#tpu.dimension_semantics<parallel>, #tpu.dimension_semantics<parallel>], iteration_bounds = array<i64: 1, 1>, scalar_prefetch = 0 : i64, scratch_operands = 0 : i64, tpu.core_type = #tpu.core_type<tc>, window_params = [{transform_indices = @transform_0, window_bounds = array<i64: 8, 256>}, {transform_indices = @transform_1, window_bounds = array<i64: 8, 2>}, {transform_indices = @transform_2, window_bounds = array<i64: 8, 256>}]} {
    %c0 = arith.constant 0 : index
    %c0_0 = arith.constant 0 : index
    %0 = vector.load %arg2[%c0, %c0_0] : memref<8x256xf32, #tpu.memory_space<vmem>>, vector<8x256xf32>
    %c0_1 = arith.constant 0 : index
    %c0_2 = arith.constant 0 : index
    %1 = vector.load %arg3[%c0_1, %c0_2] : memref<8x2xf32, #tpu.memory_space<vmem>>, vector<8x2xf32>
    %2 = vector.extract_strided_slice %1 {offsets = [0, 0], sizes = [8, 1], strides = [1, 1]} : vector<8x2xf32> to vector<8x1xf32>
    %3 = vector.extract_strided_slice %1 {offsets = [0, 1], sizes = [8, 1], strides = [1, 1]} : vector<8x2xf32> to vector<8x1xf32>
    %4 = vector.broadcast %2 : vector<8x1xf32> to vector<8x256xf32>
    %5 = arith.subf %0, %4 : vector<8x256xf32>
    %6 = vector.broadcast %3 : vector<8x1xf32> to vector<8x256xf32>
    %7 = arith.divf %5, %6 : vector<8x256xf32>
    %c0_3 = arith.constant 0 : index
    %c0_4 = arith.constant 0 : index
    %8 = vector.load %arg4[%c0_3, %c0_4] : memref<8x256xf32, #tpu.memory_space<vmem>>, vector<8x256xf32>
    tpu.vector_store %arg4[%c0_3, %c0_4], %7 {strides = array<i32>} : memref<8x256xf32, #tpu.memory_space<vmem>>, vector<8x256xf32>,
    return
  }
  func.func @transform_0(%arg0: i32, %arg1: i32) -> (i32, i32) {
    %c0_i32 = arith.constant 0 : i32
    return %arg0, %arg1 : i32, i32
  }
  func.func @transform_1(%arg0: i32, %arg1: i32) -> (i32, i32) {
    %c0_i32 = arith.constant 0 : i32
    %c0_i32_0 = arith.constant 0 : i32
    return %arg0, %c0_i32 : i32, i32
  }
  func.func @transform_2(%arg0: i32, %arg1: i32) -> (i32, i32) {
    %c0_i32 = arith.constant 0 : i32
    return %arg0, %arg1 : i32, i32
  }
}

</mosaic_0001>

<bundles_post_ra>
// kernel: tpu_custom_call.1
= control target key start
LH: loop header
LB: loop body
LE: loop exit
PB: predicated region body
PF: predicated region fallthrough
CT: control target
= control target key end

     0   :  { %7 = vsyncpa [#allocation3], 0  ;;  %s161_s0 = inlined_call_operand.hbm [shape: f32[8,256], index: 0, kind: input, shape index: {}]   ;;  %s162_s1 = inlined_call_operand.vmem [shape: f32[8,2], index: 1, kind: input, shape index: {}]   ;;  %s163_s2 = inlined_call_operand.hbm [shape: f32[8,256], index: 2, kind: output, shape index: {}]  }
   0x1   :  { %8 = vsyncpa [#allocation4], 0  ;;  %s115_s9 = smov [#allocation2]   ;;  %s67_s13 = scalar_lea.hbm %s161_s0, 256 }
   0x2   :  { %s15_s10 = sshll.u32 %s115_s9, 4  ;;  %p68_p0 = scmp.ne.s32.totalorder %s161_s0, %s67_s13  ;;  %s16_s10 = int_to_ptr.vmem [resolvable:$true] %s15_s10 }
   0x3   :  { %p71_p1 = scmp.lt.u32.totalorder %s67_s13, %s161_s0 }
   0x5   :  { %p73_p2 = pnand %p71_p1, %p68_p0 }
   0x7   :  { %76 = shalt.err (!%p73_p2)
}
   0x8   :  { %s77_s18 = scalar_lea.vmem %s16_s10, 256  ;;  %p82_p4 = scmp.lt.s32.totalorder %s16_s10, %s16_s10 }
   0x9   :  { %p78_p3 = scmp.ne.s32.totalorder %s16_s10, %s77_s18  ;;  %p83_p5 = scmp.lt.s32.totalorder %s77_s18, %s77_s18 }
   0xb   :  { %p84_p6 = por %p83_p5, %p82_p4 }
   0xd   :  { %p85_p7 = pnand %p84_p6, %p78_p3 }
   0xf   :  { %88 = shalt.err (!%p85_p7)
}
  0x10   :  { %18 = dma.hbm_to_vmem [thread:$0]  %s161_s0, 256, %s16_s10, [#allocation3]  }
  0x11   :  { %111 = dma.done.wait [#allocation3], 256  }
  0x12   :  { %112 = vsyncadd [#allocation3], 4294967040  ;;  %v116_v0 = vmov 1   ;;  %v26_v1 = vld [vmem:[%s162_s1] sm:$0xff]  ;;  %v117_v2 = vmov 0   ;;  %v25_v6 = vld [vmem:[#allocation2 + $0x8] sm:$0xff] }
  0x13   :  { %62 = vset.pattern.permute.xlu0 %v116_v0  ;;  %v24_v5 = vld [vmem:[#allocation2] sm:$0xff]  ;;  %s118_s0 = smov [#allocation5]  }
  0x14   :  { %35 = vperm.xlu0 %62, %v26_v1   ;;  %s49_s23 = sshll.u32 %s118_s0, 4  ;;  %s50_s23 = int_to_ptr.vmem [resolvable:$true] %s49_s23 }
  0x15   :  { %s89_s1 = scalar_lea.vmem %s50_s23, 256  ;;  %p94_p9 = scmp.lt.s32.totalorder %s50_s23, %s50_s23 }
  0x16   :  { %p90_p8 = scmp.ne.s32.totalorder %s50_s23, %s89_s1  ;;  %p95_p10 = scmp.lt.s32.totalorder %s89_s1, %s89_s1 }
  0x18   :  { %63 = vset.pattern.permute.xlu0 %v117_v2  ;;  %p96_p11 = por %p95_p10, %p94_p9 }
  0x19   :  { %29 = vperm.xlu0 %63, %v26_v1  }
  0x1a   :  { %p97_p12 = pnand %p96_p11, %p90_p8 }
  0x1d   :  { %64 = vset.pattern.permute.xlu0 %v116_v0 }
  0x93   :  { %v36_v3 = vpop.permute.xlu0 %35 }
  0x94   :  { %65 = vrcp.f32 %v36_v3 }
  0x98   :  { %v30_v4 = vpop.permute.xlu0 %29 }
  0x99   :  { %v32_v7 = vsub.f32 %v24_v5, %v30_v4  ;;  %v33_v8 = vsub.f32 %v25_v6, %v30_v4 }
  0x9e   :  { %v66_v9 = vpop.eup %65 }
  0x9f   :  { %v39_v10 = vmul.f32 %v66_v9, %v32_v7  ;;  %v40_v11 = vmul.f32 %v66_v9, %v33_v8 }
  0xa1   :  { %41 = vst [vmem:[#allocation5] sm:$0xff] %v39_v10  ;;  %42 = vst [vmem:[#allocation5 + $0x8] sm:$0xff] %v40_v11 }
  0xa2   :  { %100 = shalt.err (!%p97_p12)
}
  0xa3   :  { %s101_s26 = scalar_lea.hbm %s163_s2, 256 }
  0xa4   :  { %p102_p13 = scmp.ne.s32.totalorder %s163_s2, %s101_s26  ;;  %p105_p0 = scmp.lt.u32.totalorder %s101_s26, %s163_s2 }
  0xa6   :  { %p107_p1 = pnand %p105_p0, %p102_p13 }
  0xa8   :  { %110 = shalt.err (!%p107_p1)
}
  0xa9   :  { %52 = dma.vmem_to_hbm [thread:$0]  %s50_s23, 256, %s163_s2, [#allocation4]  }
  0xaa   :  { %113 = dma.done.wait [#allocation4], 256  }
  0xab   :  { %114 = vsyncadd [#allocation4], 4294967040 }
  0xac   :  { %56 = vsyncpa [#allocation3], 1 }
  0xad   :  { %57 = vsyncpa [#allocation4], 1 }

</bundles_post_ra>
